<compile_context>
chip_gen: v7x
topology: tpu7x:2x2x1
jax: 0.10.0
libtpu: 0.0.40
codegen_flags: <defaults>
</compile_context>

<pallas_src>
import jax
import jax.numpy as jnp
from jax import lax
from jax.experimental import pallas as pl
from jax.experimental.pallas import tpu as pltpu

LANES = 128
SUBLANES = 8
MAX_BLOCK_ROWS = 8192            # (8192,128) f32 = 4 MiB per block, double-buffered
NCORES = 2                       # leading "parallel" grid axis (v7x megacore split)
VMEM_LIMIT = 32 * 1024 * 1024    # >= v5e scoped default, <= v6e/v7x defaults
MINMAX_CHUNK = 512               # kernel-1 strip rows (bounds unrolled code size)
NBINS = 2048
HI = NBINS // LANES              # 16 "high" bin groups of 128 bins each
SUB = 8                          # rows per MXU histogram sub-chunk
QMIN, QMAX = -128, 127           # horizon qint8 (per_tensor_symmetric)
EPS = float(jnp.finfo(jnp.float32).eps)
AVERAGING_CONSTANT = 0.01
PERCENTILES = (0.999, 0.9995, 0.9999, 0.99993, 0.99995,
               0.99997, 0.99999, 0.999995, 0.999999)
NUM_CAND = len(PERCENTILES)


# ---------------------------------------------------------------- data prep ---
def _prep(x):
    """Flatten to (rows, 128); pad only when needed. Returns (x2d, n_valid)."""
    xf = x.reshape(-1)
    n = int(xf.shape[0])
    total = -(-n // (SUBLANES * LANES)) * (SUBLANES * LANES)
    if total != n:                       # avoid a full HBM pad-copy when unnecessary
        xf = jnp.pad(xf, (0, total - n))
    return xf.reshape(total // LANES, LANES), n


def _block_cfg(rows):
    """Rows per block / #blocks / #blocks-per-core for a (NCORES, nblk_pc) grid."""
    rows_pc = -(-rows // NCORES)                         # split rows across cores
    rows_pc = -(-rows_pc // SUBLANES) * SUBLANES         # multiple of 8
    block_rows = min(MAX_BLOCK_ROWS, rows_pc)
    nblk = pl.cdiv(rows, block_rows)
    nblk_pc = pl.cdiv(nblk, NCORES)
    return block_rows, nblk, nblk_pc


def _iota_ids(shape, row0):
    """Global flat element index for every slot of an (R, 128) tile starting at row0."""
    r = jax.lax.broadcasted_iota(jnp.int32, shape, 0)
    c = jax.lax.broadcasted_iota(jnp.int32, shape, 1)
    return (row0 + r) * LANES + c        # int32: fine for tensors < 2^31 elements


def _x_index_map(nblk_pc, nblk):
    # Clamp OOB blocks (ragged core split) to the last real block; their compute is
    # skipped in-kernel, so only (at most) one redundant DMA happens.
    return lambda c, j: (jnp.minimum(c * nblk_pc + j, nblk - 1), 0)


# ------------------------------------------------------------ kernel 1: aminmax
def _global_minmax(x2d, n):
    rows = x2d.shape[0]
    block_rows, nblk, nblk_pc = _block_cfg(rows)
    k1 = MINMAX_CHUNK if block_rows % MINMAX_CHUNK == 0 else block_rows
    nchunks = block_rows // k1
    groups = k1 // SUBLANES
    has_tail = (nblk * block_rows * LANES) != n

    def kernel(x_ref, min_ref, max_ref):
        c = pl.program_id(0)
        j = pl.program_id(1)
        g = c * nblk_pc + j                      # global block index

        @pl.when(j == 0)
        def _():
            min_ref[0] = jnp.full((SUBLANES, LANES), jnp.inf, jnp.float32)
            max_ref[0] = jnp.full((SUBLANES, LANES), -jnp.inf, jnp.float32)

        def run_block(masked):
            base_row = g * block_rows

            def body(t, carry):
                mn, mx = carry
                r0 = pl.multiple_of(t * k1, k1)
                xs = x_ref[pl.ds(r0, k1), :]
                if masked:
                    valid = _iota_ids((k1, LANES), base_row + r0) < n
                    lo = jnp.where(valid, xs, jnp.inf)
                    hi = jnp.where(valid, xs, -jnp.inf)
                else:
                    lo = xs
                    hi = xs
                lo = lo.reshape(groups, SUBLANES, LANES)
                hi = hi.reshape(groups, SUBLANES, LANES)
                return (jnp.minimum(mn, jnp.min(lo, axis=0)),
                        jnp.maximum(mx, jnp.max(hi, axis=0)))

            mn, mx = lax.fori_loop(0, nchunks, body, (min_ref[0], max_ref[0]))
            min_ref[0] = mn
            max_ref[0] = mx

        if has_tail:                              # only the last block can contain padding
            @pl.when(g < nblk - 1)
            def _():
                run_block(False)

            @pl.when(g == nblk - 1)
            def _():
                run_block(True)
        else:
            @pl.when(g < nblk)
            def _():
                run_block(False)

    mins, maxs = pl.pallas_call(
        kernel,
        out_shape=(jax.ShapeDtypeStruct((NCORES, SUBLANES, LANES), jnp.float32),
                   jax.ShapeDtypeStruct((NCORES, SUBLANES, LANES), jnp.float32)),
        grid_spec=pltpu.PrefetchScalarGridSpec(
            num_scalar_prefetch=0,
            grid=(NCORES, nblk_pc),
            in_specs=[pl.BlockSpec((block_rows, LANES), _x_index_map(nblk_pc, nblk))],
            out_specs=[pl.BlockSpec((1, SUBLANES, LANES), lambda c, j: (c, 0, 0)),
                       pl.BlockSpec((1, SUBLANES, LANES), lambda c, j: (c, 0, 0))]),
        compiler_params=pltpu.CompilerParams(
            dimension_semantics=("parallel", "arbitrary"),
            vmem_limit_bytes=VMEM_LIMIT),
    )(x2d)
    return mins, maxs


# --------------------------------------------------------- kernel 2: histogram
def _abs_histogram(x2d, n, inv_width):
    rows = x2d.shape[0]
    block_rows, nblk, nblk_pc = _block_cfg(rows)
    nsub = block_rows // SUB
    has_tail = (nblk * block_rows * LANES) != n

    def kernel(invw_ref, x_ref, hist_ref):
        c = pl.program_id(0)
        j = pl.program_id(1)
        g = c * nblk_pc + j
        invw = invw_ref[0]

        @pl.when(j == 0)
        def _():
            hist_ref[0] = jnp.zeros((HI, LANES), jnp.int32)

        def run_block(masked):
            base_row = g * block_rows

            def sub_body(si, acc):
                r0 = pl.multiple_of(si * SUB, SUB)
                xs = x_ref[pl.ds(r0, SUB), :]                            # (SUB, 128)
                idx = jnp.clip(jnp.floor(jnp.abs(xs) * invw).astype(jnp.int32),
                               0, NBINS - 1)
                if masked:
                    valid = _iota_ids((SUB, LANES), base_row + r0) < n
                    idx = jnp.where(valid, idx, NBINS)   # hi = 16: never matches
                hi = idx // LANES
                lo = idx - hi * LANES
                hi_oh = (hi[:, None, :] ==
                         jax.lax.broadcasted_iota(jnp.int32, (SUB, HI, LANES), 1)
                         ).astype(jnp.bfloat16)                          # (SUB, 16, 128)
                lo_oh = (lo[:, None, :] ==
                         jax.lax.broadcasted_iota(jnp.int32, (SUB, LANES, LANES), 1)
                         ).astype(jnp.bfloat16)                          # (SUB, 128, 128)
                # hi/lo one-hot contraction on the MXU (exact: 0/1 in bf16, f32 accum)
                part = jnp.einsum("shl,sbl->shb", hi_oh, lo_oh,
                                  preferred_element_type=jnp.float32)    # (SUB, 16, 128)
                return acc + jnp.sum(part, axis=0)

            acc = lax.fori_loop(0, nsub, sub_body,
                                jnp.zeros((HI, LANES), jnp.float32))
            # per-block partial <= 2^20 counts (exact in f32); cross-block accum in i32
            hist_ref[0] += acc.astype(jnp.int32)

        if has_tail:
            @pl.when(g < nblk - 1)
            def _():
                run_block(False)

            @pl.when(g == nblk - 1)
            def _():
                run_block(True)
        else:
            @pl.when(g < nblk)
            def _():
                run_block(False)

    hist = pl.pallas_call(
        kernel,
        out_shape=jax.ShapeDtypeStruct((NCORES, HI, LANES), jnp.int32),
        grid_spec=pltpu.PrefetchScalarGridSpec(
            num_scalar_prefetch=0,
            grid=(NCORES, nblk_pc),
            in_specs=[pl.BlockSpec(memory_space=pltpu.MemorySpace.SMEM),
                      pl.BlockSpec((block_rows, LANES), _x_index_map(nblk_pc, nblk))],
            out_specs=pl.BlockSpec((1, HI, LANES), lambda c, j: (c, 0, 0))),
        compiler_params=pltpu.CompilerParams(
            dimension_semantics=("parallel", "arbitrary"),
            vmem_limit_bytes=VMEM_LIMIT),
    )(jnp.reshape(inv_width, (1,)).astype(jnp.float32), x2d)
    return jnp.sum(hist, axis=0).reshape(NBINS)      # bin = hi * 128 + lo


# ----------------------------------------------- kernel 3: fake-quant L2 error
def _quant_sqerr(x2d, n, scales):
    rows = x2d.shape[0]
    block_rows, nblk, nblk_pc = _block_cfg(rows)
    chunk = 16 if block_rows % 16 == 0 else 8
    nchunk = block_rows // chunk
    has_tail = (nblk * block_rows * LANES) != n
    scales = scales.astype(jnp.float32)
    inv_scales = (1.0 / scales).astype(jnp.float32)   # scales >= EPS, safe

    def kernel(s_ref, inv_ref, x_ref, err_ref):
        c = pl.program_id(0)
        j = pl.program_id(1)
        g = c * nblk_pc + j

        @pl.when(j == 0)
        def _():
            err_ref[0] = jnp.zeros((NUM_CAND, chunk, LANES), jnp.float32)

        svals = [s_ref[k] for k in range(NUM_CAND)]
        ivals = [inv_ref[k] for k in range(NUM_CAND)]

        def run_block(masked):
            base_row = g * block_rows

            def body(ci, accs):
                r0 = pl.multiple_of(ci * chunk, chunk)
                xs = x_ref[pl.ds(r0, chunk), :]                  # resident (chunk,128)
                if masked:
                    # zeroed padding fake-quantizes to exactly 0 -> contributes no error
                    valid = _iota_ids((chunk, LANES), base_row + r0) < n
                    xs = jnp.where(valid, xs, 0.0)
                out = []
                for k in range(NUM_CAND):
                    # scale_quanti: symmetric, zero_point=0, clamp [qmin,qmax], dequant.
                    # TODO(synk): horizon QuantRoundMode assumed half-to-even (jnp.round).
                    q = jnp.clip(jnp.round(xs * ivals[k]),
                                 float(QMIN), float(QMAX)) * svals[k]
                    d = xs - q
                    out.append(accs[k] + d * d)
                return tuple(out)

            init = tuple(jnp.zeros((chunk, LANES), jnp.float32)
                         for _ in range(NUM_CAND))
            accs = lax.fori_loop(0, nchunk, body, init)
            err_ref[0] += jnp.stack(accs, axis=0)

        if has_tail:
            @pl.when(g < nblk - 1)
            def _():
                run_block(False)

            @pl.when(g == nblk - 1)
            def _():
                run_block(True)
        else:
            @pl.when(g < nblk)
            def _():
                run_block(False)

    err = pl.pallas_call(
        kernel,
        out_shape=jax.ShapeDtypeStruct((NCORES, NUM_CAND, chunk, LANES), jnp.float32),
        grid_spec=pltpu.PrefetchScalarGridSpec(
            num_scalar_prefetch=0,
            grid=(NCORES, nblk_pc),
            in_specs=[pl.BlockSpec(memory_space=pltpu.MemorySpace.SMEM),
                      pl.BlockSpec(memory_space=pltpu.MemorySpace.SMEM),
                      pl.BlockSpec((block_rows, LANES), _x_index_map(nblk_pc, nblk))],
            out_specs=pl.BlockSpec((1, NUM_CAND, chunk, LANES),
                                   lambda c, j: (c, 0, 0, 0))),
        compiler_params=pltpu.CompilerParams(
            dimension_semantics=("parallel", "arbitrary"),
            vmem_limit_bytes=VMEM_LIMIT),
    )(scales, inv_scales, x2d)
    return jnp.sum(err, axis=(0, 2, 3))              # (NUM_CAND,)


# ------------------------------------------------------------------ glue (JAX)
def _compute_scale_symmetric(min_val, max_val, quant_min, quant_max, eps,
                             pow_quantization=False):
    scale = jnp.maximum(jnp.maximum(-min_val, max_val), 0.0)
    scale = scale / (float(quant_max - quant_min) / 2.0)
    scale = jnp.maximum(scale, eps)
    if pow_quantization:
        scale = 1.0 / 2.0 ** jnp.clip(jnp.floor(-jnp.log2(scale)), 1, 14)
    return scale


def mix_observer_forward(x_orig, min_val=None, max_val=None,
                         averaging_constant=AVERAGING_CONSTANT):
    """Returns (x_orig unchanged, new min_val[1], new max_val[1])."""
    if x_orig.size == 0:
        return x_orig, min_val, max_val
    x = x_orig.astype(jnp.float32)
    x2d, n = _prep(x)

    # percentile observer (min/max + |x| histogram)
    mins, maxs = _global_minmax(x2d, n)
    min_cur = jnp.min(mins)
    max_cur = jnp.max(maxs)
    max_range = jnp.maximum(-min_cur, max_cur)
    inv_width = NBINS / jnp.maximum(max_range, EPS)
    hist = _abs_histogram(x2d, n, inv_width)            # int32, exact counts

    cum = jnp.cumsum(hist.astype(jnp.float32))          # matches torch f32 cumsum
    thresholds = jnp.array(PERCENTILES, jnp.float32) * n
    # torch.unique skipped: duplicated candidates cannot change the selected min/max.
    indexs = jnp.searchsorted(cum, thresholds)
    clip_values = (indexs.astype(jnp.float32) + 0.5) * (max_range / NBINS)
    min_curs = jnp.maximum(min_cur, -clip_values)
    max_curs = jnp.minimum(max_cur, clip_values)

    scales = _compute_scale_symmetric(min_curs, max_curs, QMIN, QMAX, EPS)
    sqerrs = _quant_sqerr(x2d, n, scales)
    best = jnp.argmin(sqerrs)      # == first argmax of -||x - x_fq||_2 (sqrt monotone)
    best_min = min_curs[best].reshape(1)
    best_max = max_curs[best].reshape(1)

    if min_val is None or max_val is None or min_val.size == 0:
        new_min, new_max = best_min, best_max
    else:
        new_min = min_val + averaging_constant * (best_min - min_val)
        new_max = max_val + averaging_constant * (best_max - max_val)
    # TODO(synk): is_sync_quantize (dist.all_reduce) path not applicable on single host.
    return x_orig, new_min, new_max


# --------------------------------------------------------- plain-JAX reference
def _reference_best_minmax(x):
    xf = x.astype(jnp.float32).reshape(-1)
    n = xf.size
    min_cur, max_cur = jnp.min(xf), jnp.max(xf)
    max_range = jnp.maximum(-min_cur, max_cur)
    inv_width = NBINS / jnp.maximum(max_range, EPS)
    idx = jnp.clip(jnp.floor(jnp.abs(xf) * inv_width).astype(jnp.int32), 0, NBINS - 1)
    hist = jnp.zeros(NBINS, jnp.float32).at[idx].add(1.0)
    cum = jnp.cumsum(hist)
    th = jnp.array(PERCENTILES, jnp.float32) * n
    indexs = jnp.searchsorted(cum, th)
    clip_values = (indexs.astype(jnp.float32) + 0.5) * (max_range / NBINS)
    min_curs = jnp.maximum(min_cur, -clip_values)
    max_curs = jnp.minimum(max_cur, clip_values)
    scales = _compute_scale_symmetric(min_curs, max_curs, QMIN, QMAX, EPS)
    q = jnp.clip(jnp.round(xf[None, :] / scales[:, None]), QMIN, QMAX) * scales[:, None]
    sq = jnp.sum((xf[None, :] - q) ** 2, axis=1)
    best = jnp.argmin(sq)
    return min_curs[best], max_curs[best]


if __name__ == "__main__":
    key = jax.random.PRNGKey(0)
    x = jax.random.normal(key, (2, 4, 16, 16), dtype=jnp.float32)  # NCHW

    x_out, min_val, max_val = mix_observer_forward(x)
    jax.block_until_ready((x_out, min_val, max_val))

    ref_min, ref_max = _reference_best_minmax(x)
    assert jnp.allclose(min_val[0], ref_min, rtol=1e-5, atol=1e-6), (min_val, ref_min)
    assert jnp.allclose(max_val[0], ref_max, rtol=1e-5, atol=1e-6), (max_val, ref_max)
    assert jnp.array_equal(x_out, x)   # forward returns x_orig unchanged

    # odd-sized tensor exercises the gated tail-block masking path
    x_odd = 0.5 * jax.random.normal(jax.random.PRNGKey(2), (3, 5, 7, 11),
                                    dtype=jnp.float32)
    _, min_o, max_o = mix_observer_forward(x_odd)
    ref_min_o, ref_max_o = _reference_best_minmax(x_odd)
    assert jnp.allclose(min_o[0], ref_min_o, rtol=1e-5, atol=1e-6), (min_o, ref_min_o)
    assert jnp.allclose(max_o[0], ref_max_o, rtol=1e-5, atol=1e-6), (max_o, ref_max_o)

    # second call exercises the moving-average state-update path
    x2 = 2.0 * jax.random.normal(jax.random.PRNGKey(1), (2, 4, 16, 16),
                                 dtype=jnp.float32)
    _, min_val2, max_val2 = mix_observer_forward(x2, min_val, max_val)
    jax.block_until_ready((min_val2, max_val2))

    print("KERNEL_OK")
</pallas_src>

<mosaic_0001>
module attributes {stable_mosaic.version = 11 : i64} {
  func.func @kernel(%arg0: i32, %arg1: i32, %arg2: memref<8x128xf32, #tpu.memory_space<vmem>>, %arg3: memref<1x8x128xf32, #tpu.memory_space<vmem>>, %arg4: memref<1x8x128xf32, #tpu.memory_space<vmem>>) attributes {dimension_semantics = [#tpu.dimension_semantics<parallel>, #tpu.dimension_semantics<arbitrary>], iteration_bounds = array<i64: 2, 1>, scalar_prefetch = 0 : i64, scratch_operands = 0 : i64, tpu.core_type = #tpu.core_type<tc>, window_params = [{transform_indices = @transform_0, window_bounds = array<i64: 8, 128>}, {transform_indices = @transform_1, window_bounds = array<i64: 1, 8, 128>}, {transform_indices = @transform_2, window_bounds = array<i64: 1, 8, 128>}]} {
    %c1_i32 = arith.constant 1 : i32
    %0 = arith.muli %arg0, %c1_i32 : i32
    %1 = arith.addi %0, %arg1 : i32
    %c0_i32 = arith.constant 0 : i32
    %2 = arith.cmpi eq, %arg1, %c0_i32 : i32
    %3 = arith.extui %2 : i1 to i32
    %c0_i32_0 = arith.constant 0 : i32
    %4 = arith.cmpi ne, %3, %c0_i32_0 : i32
    scf.if %4 {
      %cst = arith.constant 0x7F800000 : f32
      %8 = vector.broadcast %cst : f32 to vector<8x128xf32>
      %c0 = arith.constant 0 : index
      %c0_2 = arith.constant 0 : index
      %c0_3 = arith.constant 0 : index
      %9 = vector.load %arg3[%c0, %c0_2, %c0_3] : memref<1x8x128xf32, #tpu.memory_space<vmem>>, vector<1x8x128xf32>
      %10 = vector.shape_cast %9 : vector<1x8x128xf32> to vector<8x128xf32>
      %11 = vector.shape_cast %8 : vector<8x128xf32> to vector<1x8x128xf32>
      tpu.vector_store %arg3[%c0, %c0_2, %c0_3], %11 {strides = array<i32>} : memref<1x8x128xf32, #tpu.memory_space<vmem>>, vector<1x8x128xf32>,
      %cst_4 = arith.constant 0xFF800000 : f32
      %12 = vector.broadcast %cst_4 : f32 to vector<8x128xf32>
      %c0_5 = arith.constant 0 : index
      %c0_6 = arith.constant 0 : index
      %c0_7 = arith.constant 0 : index
      %13 = vector.load %arg4[%c0_5, %c0_6, %c0_7] : memref<1x8x128xf32, #tpu.memory_space<vmem>>, vector<1x8x128xf32>
      %14 = vector.shape_cast %13 : vector<1x8x128xf32> to vector<8x128xf32>
      %15 = vector.shape_cast %12 : vector<8x128xf32> to vector<1x8x128xf32>
      tpu.vector_store %arg4[%c0_5, %c0_6, %c0_7], %15 {strides = array<i32>} : memref<1x8x128xf32, #tpu.memory_space<vmem>>, vector<1x8x128xf32>,
    } else {
    }
    %c2_i32 = arith.constant 2 : i32
    %5 = arith.cmpi slt, %1, %c2_i32 : i32
    %6 = arith.extui %5 : i1 to i32
    %c0_i32_1 = arith.constant 0 : i32
    %7 = arith.cmpi ne, %6, %c0_i32_1 : i32
    scf.if %7 {
      %c0 = arith.constant 0 : index
      %c0_2 = arith.constant 0 : index
      %c0_3 = arith.constant 0 : index
      %8 = vector.load %arg3[%c0, %c0_2, %c0_3] : memref<1x8x128xf32, #tpu.memory_space<vmem>>, vector<1x8x128xf32>
      %9 = vector.shape_cast %8 : vector<1x8x128xf32> to vector<8x128xf32>
      %c0_4 = arith.constant 0 : index
      %c0_5 = arith.constant 0 : index
      %c0_6 = arith.constant 0 : index
      %10 = vector.load %arg4[%c0_4, %c0_5, %c0_6] : memref<1x8x128xf32, #tpu.memory_space<vmem>>, vector<1x8x128xf32>
      %11 = vector.shape_cast %10 : vector<1x8x128xf32> to vector<8x128xf32>
      %c0_i32_7 = arith.constant 0 : i32
      %c8_i32 = arith.constant 8 : i32
      %12 = arith.muli %c0_i32_7, %c8_i32 : i32
      %13 = tpu.assume_multiple %12, 8 : i32
      %14 = arith.index_cast %13 : i32 to index
      %c0_8 = arith.constant 0 : index
      %15 = vector.load %arg2[%14, %c0_8] : memref<8x128xf32, #tpu.memory_space<vmem>>, vector<8x128xf32>
      %16 = vector.shape_cast %15 : vector<8x128xf32> to vector<1x8x128xf32>
      %17 = vector.shape_cast %15 : vector<8x128xf32> to vector<1x8x128xf32>
      %cst = arith.constant dense<0x7F800000> : vector<8x128xf32>
      %18 = vector.multi_reduction <minimumf>, %16, %cst [0] : vector<1x8x128xf32> to vector<8x128xf32>
      %19 = arith.minimumf %9, %18 : vector<8x128xf32>
      %cst_9 = arith.constant dense<0xFF800000> : vector<8x128xf32>
      %20 = vector.multi_reduction <maximumf>, %17, %cst_9 [0] : vector<1x8x128xf32> to vector<8x128xf32>
      %21 = arith.maximumf %11, %20 : vector<8x128xf32>
      %c1_i32_10 = arith.constant 1 : i32
      %c0_11 = arith.constant 0 : index
      %c0_12 = arith.constant 0 : index
      %c0_13 = arith.constant 0 : index
      %22 = vector.load %arg3[%c0_11, %c0_12, %c0_13] : memref<1x8x128xf32, #tpu.memory_space<vmem>>, vector<1x8x128xf32>
      %23 = vector.shape_cast %22 : vector<1x8x128xf32> to vector<8x128xf32>
      %24 = vector.shape_cast %19 : vector<8x128xf32> to vector<1x8x128xf32>
      tpu.vector_store %arg3[%c0_11, %c0_12, %c0_13], %24 {strides = array<i32>} : memref<1x8x128xf32, #tpu.memory_space<vmem>>, vector<1x8x128xf32>,
      %c0_14 = arith.constant 0 : index
      %c0_15 = arith.constant 0 : index
      %c0_16 = arith.constant 0 : index
      %25 = vector.load %arg4[%c0_14, %c0_15, %c0_16] : memref<1x8x128xf32, #tpu.memory_space<vmem>>, vector<1x8x128xf32>
      %26 = vector.shape_cast %25 : vector<1x8x128xf32> to vector<8x128xf32>
      %27 = vector.shape_cast %21 : vector<8x128xf32> to vector<1x8x128xf32>
      tpu.vector_store %arg4[%c0_14, %c0_15, %c0_16], %27 {strides = array<i32>} : memref<1x8x128xf32, #tpu.memory_space<vmem>>, vector<1x8x128xf32>,
    } else {
    }
    return
  }
  func.func @transform_0(%arg0: i32, %arg1: i32) -> (i32, i32) {
    %c1_i32 = arith.constant 1 : i32
    %0 = arith.muli %arg0, %c1_i32 : i32
    %1 = arith.addi %0, %arg1 : i32
    %c1_i32_0 = arith.constant 1 : i32
    %2 = arith.minsi %1, %c1_i32_0 : i32
    %c0_i32 = arith.constant 0 : i32
    %c0_i32_1 = arith.constant 0 : i32
    return %2, %c0_i32 : i32, i32
  }
  func.func @transform_1(%arg0: i32, %arg1: i32) -> (i32, i32, i32) {
    %c0_i32 = arith.constant 0 : i32
    %c0_i32_0 = arith.constant 0 : i32
    %c0_i32_1 = arith.constant 0 : i32
    return %arg0, %c0_i32, %c0_i32_0 : i32, i32, i32
  }
  func.func @transform_2(%arg0: i32, %arg1: i32) -> (i32, i32, i32) {
    %c0_i32 = arith.constant 0 : i32
    %c0_i32_0 = arith.constant 0 : i32
    %c0_i32_1 = arith.constant 0 : i32
    return %arg0, %c0_i32, %c0_i32_0 : i32, i32, i32
  }
}

</mosaic_0001>

<bundles_post_ra>
// kernel: tpu_custom_call.1
= control target key start
LH: loop header
LB: loop body
LE: loop exit
PB: predicated region body
PF: predicated region fallthrough
CT: control target
= control target key end

     0   :  { %8 = vsyncpa [#allocation3], 0  ;;  %s890_s0 = inlined_call_operand.hbm [shape: f32[16,128], index: 0, kind: input, shape index: {}]   ;;  %s891_s1 = inlined_call_operand.hbm [shape: f32[2,8,128], index: 1, kind: output, shape index: {0}]   ;;  %s892_s2 = inlined_call_operand.hbm [shape: f32[2,8,128], index: 2, kind: output, shape index: {1}]  }
   0x1   :  { %10 = vsyncpa [#allocation3 + $0x1], 0 }
   0x2   :  { %11 = vsyncpa [#allocation4], 0 }
   0x3   :  { %13 = vsyncpa [#allocation4 + $0x1], 0 }
   0x4   :  { %14 = vsyncpa [#allocation7], 0 }
   0x5   :  { %16 = vsyncpa [#allocation7 + $0x1], 0  ;;  %s654_s9 = smov 0   ;;  %s656_s10 = smov 0  }
   0x6   :  { %s658_s11 = smov 0   ;;  %s660_s12 = smov 0  }
   0x7   :  { %s662_s13 = smov 0   ;;  %s664_s14 = smov 0  }
   0x8   :  { %s666_s15 = smov 0   ;;  %s668_s16 = smov 0  }
   0x9   :  { %s670_s17 = smov 0  }
   0xa LB: > { %s354_s18 = sadd.s32 4294967295, %s632_s17   ;;  %s355_s19 = sadd.s32 4294967294, %s632_s17   ;;  %s632_s17 = sphi %s670_s17, %s22_s17   ;;  %s628_s16 = sphi %s668_s16, %s911_s16   ;;  %s624_s15 = sphi %s666_s15, %s910_s15   ;;  %s620_s14 = sphi %s664_s14, %s909_s14   ;;  %s616_s13 = sphi %s662_s13, %s908_s13   ;;  %s612_s12 = sphi %s660_s12, %s907_s12   ;;  %s608_s11 = sphi %s658_s11, %s906_s11   ;;  %s604_s10 = sphi %s656_s10, %s905_s10   ;;  %s600_s9 = sphi %s654_s9, %s904_s9  }
   0xb   : > { %s34_s20 = sadd.s32 1, %s628_s16  ;;  %p39_p0 = scmp.lt.s32.totalorder %s628_s16, 1 }
   0xc   : > { %p36_p1 = scmp.ge.s32.totalorder %s34_s20, 2  ;;  %s47_s21 = sadd.s32 1, %s620_s14 }
   0xd   : > { %s703_s22 = scalar_select %p39_p0, %s628_s16, 1 }
   0xe   : > { %s913_s20 = smov (%p36_p1, %s34_s20), 0  ;;  %p54_p2 = scmp.ne.s32.totalorder %s620_s14, %s616_s13 }
   0xf   : > { %p55_p3 = scmp.eq.s32.totalorder %s632_s17, 0  ;;  %p42_p4 = scmp.lt.s32.totalorder %s913_s20, 1 }
  0x10   : > { %p60_p5 = scmp.ne.s32.totalorder %s616_s13, %s612_s12  ;;  %p61_p7 = scmp.eq.s32.totalorder %s354_s18, 0 }
  0x11   : > { %p712_p6 = por %p55_p3, %p54_p2  ;;  %s70_s26 = ssub.s32 %s628_s16, %s913_s20 }
  0x12   : > { %s43_s24 = scalar_select %p42_p4, %s913_s20, 1 }
  0x13   : > { %p717_p8 = por %p61_p7, %p60_p5  ;;  %p71_p9 = scmp.eq.s32.totalorder %s70_s26, 0 }
  0x14   : > { %s44_s27 = ssub.s32 %s703_s22, %s43_s24  ;;  %s73_s28 = sadd.s32 1, %s608_s11 }
  0x15   : > { %p45_p10 = scmp.eq.s32.totalorder %s44_s27, 0  ;;  %p83_p11 = scmp.ne.s32.totalorder %s608_s11, %s604_s10 }
  0x16   : > { %s726_s29 = scalar_select %p71_p9, %s608_s11, %s73_s28  }
  0x17   : > { %s729_s30 = scalar_select %p45_p10, %s620_s14, %s47_s21  }
  0x18   : > { %p84_p12 = scmp.eq.s32.totalorder %s354_s18, 1  ;;  %p89_p13 = scmp.ne.s32.totalorder %s604_s10, %s600_s9 }
  0x19   : > { %p90_p0 = scmp.eq.s32.totalorder %s355_s19, 1  ;;  %p388_p4 = scmp.lt.s32.totalorder %s632_s17, 2 }
  0x1a   : > { %p735_p1 = por %p84_p12, %p83_p11  ;;  %s136_s5 = sand.u32 1, %s620_s14  }
  0x1b   : > { %p740_p3 = por %p90_p0, %p89_p13  ;;  %s359_s6 = sshll.u32 %s703_s22, 7 }
  0x1c   : > { %s896_s3 = scalar_select %p735_p1, 1, 0 }
  0x1d   : > { %s897_s4 = scalar_select %p740_p3, 1, 0 }
  0x1e   : > { %s358_s7 = sshll.u32 %s136_s5, 3  ;;  %s750_s18 = scalar_lea.hbm %s890_s0, %s359_s6 }
  0x1f   : > { %s140_s19 = scalar_lea.vmem [#allocation2], %s358_s7  ;;  %p754_p5 = pnand %p388_p4, %p712_p6 }
  0x20   : > { %s150_s21 = sshll.u32 %s140_s19, 4  ;;  %s137_s22 = scalar_lea.sflag [#allocation3], %s136_s5  ;;  %s758_s21 = int_to_ptr.vmem [resolvable:$true] %s150_s21 }
  0x21   : > { %s464_s26 = scalar_lea.hbm %s750_s18, 128  ;;  %p466_p11 = pneg %p754_p5 }
  0x22   : > { %p465_p10 = scmp.ne.s32.totalorder %s750_s18, %s464_s26  ;;  %s469_s28 = scalar_lea.hbm %s890_s0, 256 }
  0x23   : > { %p470_p6 = scmp.lt.u32.totalorder %s750_s18, %s890_s0  ;;  %p471_p0 = scmp.lt.u32.totalorder %s469_s28, %s464_s26 }
  0x24   : > { %p467_p12 = pnand %p466_p11, %p465_p10  ;;  %p473_p2 = scmp.lt.u32.totalorder %s464_s26, %s750_s18 }
  0x25   : > { %p472_p4 = por %p471_p0, %p470_p6 }
  0x26   : > { %p468_p13 = pneg %p467_p12 }
  0x27   : > { %p474_p7 = por %p473_p2, %p472_p4 }
  0x29   : > { %p475_p9 = pnand %p474_p7, %p468_p13 }
  0x2b   : > { %478 = shalt.err (!%p475_p9)
}
  0x2c   : > { %s479_s5 = scalar_lea.vmem %s758_s21, 128  ;;  %s634_s8 = smov [#allocation2]  }
  0x2d   : > { %p480_p10 = scmp.ne.s32.totalorder %s758_s21, %s479_s5  ;;  %s484_s12 = sshll.u32 %s634_s8, 4  ;;  %s485_s12 = int_to_ptr.vmem [resolvable:$false] %s484_s12 }
  0x2e   : > { %s486_s19 = scalar_lea.vmem %s485_s12, 256  ;;  %p487_p1 = scmp.lt.s32.totalorder %s758_s21, %s485_s12 }
  0x2f   : > { %p482_p12 = pnand %p480_p10, %p466_p11  ;;  %p488_p6 = scmp.lt.s32.totalorder %s486_s19, %s479_s5 }
  0x31   : > { %p483_p3 = pneg %p482_p12  ;;  %p489_p0 = por %p488_p6, %p487_p1 }
  0x33   : > { %p490_p2 = pnand %p489_p0, %p483_p3 }
  0x35   : > { %493 = shalt.err (!%p490_p2)
}
  0x36   : > { %380 = dma.hbm_to_vmem [thread:$0]  (!%p754_p5), %s750_s18, 128, %s758_s21, %s137_s22  }
  0x37   : > { %p899_p7 = scmp.lt.s32.totalorder %s632_s17, 3  ;;  %p900_p9 = scmp.ge.s32.totalorder %s632_s17, 1 }
  0x39   : > { %p156_p11 = pnand %p900_p9, %p899_p7 }
  0x3a   : > { %s161_s26 = sand.u32 (!%p156_p11), 1, %s616_s13  }
  0x3b   : > { %159 = sbr.rel (%p156_p11) target bundleno = 130 (0x82), region = 24  ;;  %s361_s23 = sshll.u32 (!%p156_p11), %s161_s26, 3 }
  0x3c   : > { %s162_s27 = scalar_lea.sflag (!%p156_p11), [#allocation3], %s161_s26  ;;  %s165_s28 = scalar_lea.vmem (!%p156_p11), [#allocation2], %s361_s23 }
  0x42   : > { %587 = dma.done.wait (%p717_p8), %s162_s27, 128  }
  0x43   : > { %589 = vsyncadd (%p717_p8), %s162_s27, 4294967168  ;;  %s797_s24 = sand.u32 1, %s604_s10   ;;  %v635_v0 = vmov inf   ;;  %v636_v1 = vmov -inf   ;;  %p364_p1 = scmp.ge.s32.totalorder %s624_s15, 2 }
  0x44   : > { %s362_s18 = sshll.u32 %s797_s24, 3  ;;  %v207_v3 = vld [vmem:[%s165_s28] sm:$0xff] (!%p364_p1) }
  0x45   : > { %s183_s21 = scalar_lea.vmem [#allocation5], %s362_s18  ;;  %s800_s22 = scalar_lea.vmem [#allocation6], %s362_s18 }
  0x46   : > { %199 = vst [vmem:[%s183_s21] sm:$0xff] %v635_v0  ;;  %200 = vst [vmem:[%s800_s22] sm:$0xff] %v636_v1  ;;  %204 = sbr.rel (%p364_p1) target bundleno = 81 (0x51), region = 36 }
  0x4d   : > { %v205_v2 = vld [vmem:[%s183_s21] sm:$0xff]  ;;  %v206_v4 = vld [vmem:[%s800_s22] sm:$0xff] }
  0x4e   : > { %v208_v5 = vmin.f32 %v205_v2, %v207_v3  ;;  %v209_v6 = vmax.f32 %v206_v4, %v207_v3 }
  0x50   : > { %210 = vst [vmem:[%s183_s21] sm:$0xff] %v208_v5  ;;  %211 = vst [vmem:[%s800_s22] sm:$0xff] %v209_v6 }
  0x51 PF: > { %s367_s25 = sshll.u32 %s624_s15, 7  ;;  %s231_s8 = sshll.u32 %s183_s21, 4  ;;  %s232_s8 = int_to_ptr.vmem [resolvable:$true] %s231_s8 }
  0x52   : > { %s812_s5 = scalar_lea.hbm %s891_s1, %s367_s25  ;;  %s213_s12 = scalar_lea.sflag [#allocation4], %s797_s24 }
  0x53   : > { %s494_s19 = scalar_lea.vmem %s232_s8, 128  ;;  %p901_p3 = scmp.ne.s32.totalorder %s896_s3, 0 }
  0x54   : > { %p495_p8 = scmp.ne.s32.totalorder %s232_s8, %s494_s19  ;;  %s637_s26 = smov [#allocation5]  }
  0x55   : > { %s498_s23 = sshll.u32 %s637_s26, 4  ;;  %s499_s23 = int_to_ptr.vmem [resolvable:$false] %s498_s23 }
  0x56   : > { %p496_p5 = pnand %p495_p8, %p901_p3  ;;  %s500_s27 = scalar_lea.vmem %s499_s23, 256 }
  0x57   : > { %p501_p4 = scmp.lt.s32.totalorder %s232_s8, %s499_s23  ;;  %p502_p10 = scmp.lt.s32.totalorder %s500_s27, %s494_s19 }
  0x58   : > { %p497_p13 = pneg %p496_p5 }
  0x59   : > { %p503_p12 = por %p502_p10, %p501_p4 }
  0x5b   : > { %p504_p6 = pnand %p503_p12, %p497_p13 }
  0x5d   : > { %507 = shalt.err (!%p504_p6)
}
  0x5e   : > { %s508_s28 = scalar_lea.hbm %s812_s5, 128  ;;  %s512_s6 = scalar_lea.hbm %s891_s1, 256 }
  0x5f   : > { %p509_p0 = scmp.ne.s32.totalorder %s812_s5, %s508_s28  ;;  %p513_p9 = scmp.lt.u32.totalorder %s812_s5, %s891_s1 }
  0x60   : > { %p514_p11 = scmp.lt.u32.totalorder %s512_s6, %s508_s28  ;;  %p516_p8 = scmp.lt.u32.totalorder %s508_s28, %s812_s5 }
  0x61   : > { %p510_p2 = pnand %p509_p0, %p901_p3 }
  0x62   : > { %p515_p1 = por %p514_p11, %p513_p9 }
  0x63   : > { %p511_p7 = pneg %p510_p2 }
  0x64   : > { %p517_p5 = por %p516_p8, %p515_p1 }
  0x66   : > { %p518_p13 = pnand %p517_p5, %p511_p7 }
  0x68   : > { %521 = shalt.err (!%p518_p13)
}
  0x69   : > { %373 = dma.vmem_to_hbm [thread:$0]  (%p901_p3), %s232_s8, 128, %s812_s5, %s213_s12  }
  0x6a   : > { %s837_s27 = scalar_lea.hbm %s892_s2, %s367_s25  ;;  %s244_s18 = sshll.u32 %s800_s22, 4  ;;  %s245_s18 = int_to_ptr.vmem [resolvable:$true] %s244_s18 }
  0x6b   : > { %s218_s28 = scalar_lea.sflag [#allocation7], %s797_s24  ;;  %s522_s21 = scalar_lea.vmem %s245_s18, 128 }
  0x6c   : > { %p523_p4 = scmp.ne.s32.totalorder %s245_s18, %s522_s21  ;;  %s638_s6 = smov [#allocation6]  }
  0x6d   : > { %s526_s7 = sshll.u32 %s638_s6, 4  ;;  %s527_s7 = int_to_ptr.vmem [resolvable:$false] %s526_s7 }
  0x6e   : > { %p524_p10 = pnand %p523_p4, %p901_p3  ;;  %s528_s26 = scalar_lea.vmem %s527_s7, 256 }
  0x6f   : > { %p529_p6 = scmp.lt.s32.totalorder %s245_s18, %s527_s7  ;;  %p530_p0 = scmp.lt.s32.totalorder %s528_s26, %s522_s21 }
  0x70   : > { %p525_p12 = pneg %p524_p10 }
  0x71   : > { %p531_p2 = por %p530_p0, %p529_p6 }
  0x73   : > { %p532_p7 = pnand %p531_p2, %p525_p12 }
  0x75   : > { %535 = shalt.err (!%p532_p7)
}
  0x76   : > { %s536_s15 = scalar_lea.hbm %s837_s27, 128  ;;  %s540_s25 = scalar_lea.hbm %s892_s2, 256 }
  0x77   : > { %p537_p9 = scmp.ne.s32.totalorder %s837_s27, %s536_s15  ;;  %p541_p8 = scmp.lt.u32.totalorder %s837_s27, %s892_s2 }
  0x78   : > { %p542_p5 = scmp.lt.u32.totalorder %s540_s25, %s536_s15  ;;  %p544_p4 = scmp.lt.u32.totalorder %s536_s15, %s837_s27 }
  0x79   : > { %p538_p11 = pnand %p537_p9, %p901_p3 }
  0x7a   : > { %p543_p13 = por %p542_p5, %p541_p8 }
  0x7b   : > { %p539_p1 = pneg %p538_p11 }
  0x7c   : > { %p545_p10 = por %p544_p4, %p543_p13 }
  0x7e   : > { %p546_p12 = pnand %p545_p10, %p539_p1 }
  0x80   : > { %549 = shalt.err (!%p546_p12)
}
  0x81   : > { %374 = dma.vmem_to_hbm [thread:$0]  (%p901_p3), %s245_s18, 128, %s837_s27, %s218_s28  }
  0x82 PF: > { %s256_s12 = sand.u32 1, %s600_s9   ;;  %p902_p6 = scmp.ne.s32.totalorder %s897_s4, 0 }
  0x83   : > { %p903_p0 = scmp.ge.s32.totalorder %s632_s17, 2  ;;  %s257_s19 = scalar_lea.sflag [#allocation4], %s256_s12 }
  0x85   : > { %p382_p2 = pnand %p903_p0, %p902_p6 }
  0x87   : > { %591 = dma.done.wait (!%p382_p2), %s257_s19, 128  }
  0x88   : > { %593 = vsyncadd (!%p382_p2), %s257_s19, 4294967168  ;;  %s266_s23 = scalar_lea.sflag [#allocation7], %s256_s12 }
  0x89   : > { %595 = dma.done.wait (!%p382_p2), %s266_s23, 128  }
  0x8a   : > { %597 = vsyncadd (!%p382_p2), %s266_s23, 4294967168  ;;  %s22_s17 = sadd.s32 1, %s632_s17   ;;  %s904_s9 = smov %s604_s10 }
  0x8b   : > { %p19_p7 = scmp.ge.s32.totalorder %s22_s17, 4   ;;  %s905_s10 = smov %s608_s11 }
  0x8c   : > { %s906_s11 = smov %s726_s29  ;;  %s907_s12 = smov %s616_s13 }
  0x8d   : > { %s908_s13 = smov %s620_s14  ;;  %s909_s14 = smov %s729_s30 }
  0x8e   : > { %s910_s15 = smov %s628_s16  ;;  %s911_s16 = smov %s913_s20 }
  0x8f   :  { %21 = sbr.rel (!%p19_p7) target bundleno = 10 (0xa), region = 94 }
  0x96   :  { %271 = vsyncpa [#allocation3], 1 }
  0x97   :  { %273 = vsyncpa [#allocation3 + $0x1], 1 }
  0x98   :  { %274 = vsyncpa [#allocation4], 1 }
  0x99   :  { %276 = vsyncpa [#allocation4 + $0x1], 1 }
  0x9a   :  { %277 = vsyncpa [#allocation7], 1 }
  0x9b   :  { %279 = vsyncpa [#allocation7 + $0x1], 1 }

</bundles_post_ra>
